<compile_context>
chip_gen: v6e
topology: v6e:2x2x1
jax: 0.10.0
libtpu: 0.0.40
codegen_flags: <defaults>
</compile_context>

<pallas_src>
import jax
import jax.numpy as jnp
from jax.experimental import pallas as pl
from jax.experimental.pallas import tpu as pltpu

INPUT_LAYER = 26
HIDDEN1 = INPUT_LAYER * 5            # 130
HIDDEN2 = HIDDEN1 // 10              # 13
OUTPUT_LAYER = 2
BN_EPS = 1e-5

# Lane-dense padded feature sizes.
H1P = 256     # 130 -> two full 128-lane tiles
H2P = 128     # 13  -> one full tile
OUTP = 128    # 2   -> one full tile


# ---------------------------------------------------------------------------
# kernel helpers
# ---------------------------------------------------------------------------
def _linear_bf16(x_f32, w_ref, b_ref):
    """bf16 MXU matmul with f32 accumulation, f32 bias add."""
    return (jnp.dot(x_f32.astype(jnp.bfloat16), w_ref[...],
                    preferred_element_type=jnp.float32) + b_ref[...])


def _mxu_colsums(h):
    """Per-feature sum and sum-of-squares via MXU (ones @ h), f32.

    Returns (8, F) arrays whose rows are all identical (row 0 is used by the
    wrapper); keeping 8 sublanes gives clean, unmasked accumulator stores.
    """
    ones = jnp.ones((8, h.shape[0]), jnp.float32)
    s = jnp.dot(ones, h, preferred_element_type=jnp.float32)
    ss = jnp.dot(ones, h * h, preferred_element_type=jnp.float32)
    return s, ss


# ---------------------------------------------------------------------------
# kernels
# ---------------------------------------------------------------------------
def _stats1_kernel(x_ref, w1_ref, b1_ref, s_ref, ss_ref):
    @pl.when(pl.program_id(0) == 0)
    def _():
        s_ref[...] = jnp.zeros_like(s_ref)
        ss_ref[...] = jnp.zeros_like(ss_ref)

    h1 = _linear_bf16(x_ref[...], w1_ref, b1_ref)
    s, ss = _mxu_colsums(h1)
    s_ref[...] += s
    ss_ref[...] += ss


def _stats2_kernel(x_ref, w1_ref, b1_ref, sc1_ref, sh1_ref, w2_ref, b2_ref,
                   s_ref, ss_ref):
    @pl.when(pl.program_id(0) == 0)
    def _():
        s_ref[...] = jnp.zeros_like(s_ref)
        ss_ref[...] = jnp.zeros_like(ss_ref)

    h1 = _linear_bf16(x_ref[...], w1_ref, b1_ref)
    h1 = jnp.maximum(h1 * sc1_ref[...] + sh1_ref[...], 0.0)   # BN1 affine + ReLU
    h2 = _linear_bf16(h1, w2_ref, b2_ref)
    s, ss = _mxu_colsums(h2)
    s_ref[...] += s
    ss_ref[...] += ss


def _fwd_kernel(x_ref, w1_ref, b1_ref, sc1_ref, sh1_ref,
                w2_ref, b2_ref, sc2_ref, sh2_ref, w3_ref, b3_ref, o_ref):
    h1 = _linear_bf16(x_ref[...], w1_ref, b1_ref)
    h1 = jnp.maximum(h1 * sc1_ref[...] + sh1_ref[...], 0.0)
    h2 = _linear_bf16(h1, w2_ref, b2_ref)
    h2 = jnp.maximum(h2 * sc2_ref[...] + sh2_ref[...], 0.0)
    out = _linear_bf16(h2, w3_ref, b3_ref)
    o_ref[...] = out.astype(o_ref.dtype)


# ---------------------------------------------------------------------------
# wrapper
# ---------------------------------------------------------------------------
def _row_block(tb, f):
    return pl.BlockSpec((tb, f), lambda i: (i, 0))


def _whole(shape):
    # Full-array block, resident across the whole grid (constant block index).
    return pl.BlockSpec(shape, lambda i: (0,) * len(shape))


def _stat_specs(f):
    return (pl.BlockSpec((8, f), lambda i: (0, 0)),
            pl.BlockSpec((8, f), lambda i: (0, 0)))


def _stat_shapes(f):
    return (jax.ShapeDtypeStruct((8, f), jnp.float32),
            jax.ShapeDtypeStruct((8, f), jnp.float32))


def _bn_scale_shift(s, ss, batch, gamma, beta):
    """Fold training-mode BN (biased batch var) + affine into scale/shift."""
    mean = s[0:1, :] / batch
    var = jnp.maximum(ss[0:1, :] / batch - mean * mean, 0.0)
    scale = gamma * jax.lax.rsqrt(var + BN_EPS)
    shift = beta - mean * scale
    return scale, shift


def _pick_batch_tile(B):
    for tb in (512, 256, 128, 64, 32, 16, 8):
        if B % tb == 0:
            return tb
    return B  # ragged small batch: single tile (block dim == full array dim)


def my_model_forward(x, params):
    """x: (B, 26) float32 -> (B, 2) float32 (training-mode BatchNorm)."""
    B = x.shape[0]
    tb = _pick_batch_tile(B)
    nb = B // tb

    w1, b1 = params["w1"], params["b1"]
    w2, b2 = params["w2"], params["b2"]
    w3, b3 = params["w3"], params["b3"]

    arb = pltpu.CompilerParams(dimension_semantics=("arbitrary",))
    par = pltpu.CompilerParams(dimension_semantics=("parallel",))

    # ---- pass 1: full-batch stats of linear1 output -----------------------
    s1, ss1 = pl.pallas_call(
        _stats1_kernel,
        grid=(nb,),
        in_specs=[_row_block(tb, INPUT_LAYER), _whole(w1.shape), _whole(b1.shape)],
        out_specs=_stat_specs(H1P),
        out_shape=_stat_shapes(H1P),
        compiler_params=arb,
    )(x, w1, b1)
    sc1, sh1 = _bn_scale_shift(s1, ss1, B, params["g1"], params["beta1"])

    # ---- pass 2: full-batch stats of linear2 output -----------------------
    s2, ss2 = pl.pallas_call(
        _stats2_kernel,
        grid=(nb,),
        in_specs=[_row_block(tb, INPUT_LAYER),
                  _whole(w1.shape), _whole(b1.shape),
                  _whole(sc1.shape), _whole(sh1.shape),
                  _whole(w2.shape), _whole(b2.shape)],
        out_specs=_stat_specs(H2P),
        out_shape=_stat_shapes(H2P),
        compiler_params=arb,
    )(x, w1, b1, sc1, sh1, w2, b2)
    sc2, sh2 = _bn_scale_shift(s2, ss2, B, params["g2"], params["beta2"])

    # ---- pass 3: forward, lane-dense (tb, 128) output, parallel over tiles -
    out_p = pl.pallas_call(
        _fwd_kernel,
        grid=(nb,),
        in_specs=[_row_block(tb, INPUT_LAYER),
                  _whole(w1.shape), _whole(b1.shape),
                  _whole(sc1.shape), _whole(sh1.shape),
                  _whole(w2.shape), _whole(b2.shape),
                  _whole(sc2.shape), _whole(sh2.shape),
                  _whole(w3.shape), _whole(b3.shape)],
        out_specs=_row_block(tb, OUTP),
        out_shape=jax.ShapeDtypeStruct((B, OUTP), jnp.float32),
        compiler_params=par,
    )(x, w1, b1, sc1, sh1, w2, b2, sc2, sh2, w3, b3)

    return out_p[:, :OUTPUT_LAYER]


# ---------------------------------------------------------------------------
# parameter init (mirrors nn.Linear / nn.BatchNorm1d defaults, zero-padded)
# ---------------------------------------------------------------------------
def init_params(key):
    ks = jax.random.split(key, 6)

    def linear(kw, kb, fan_in, fan_out, pad_in, pad_out):
        bound = float(fan_in) ** -0.5
        w = jax.random.uniform(kw, (fan_in, fan_out), jnp.float32, -bound, bound)
        b = jax.random.uniform(kb, (1, fan_out), jnp.float32, -bound, bound)
        wp = jnp.zeros((pad_in, pad_out), jnp.float32).at[:fan_in, :fan_out].set(w)
        bp = jnp.zeros((1, pad_out), jnp.float32).at[:, :fan_out].set(b)
        return wp.astype(jnp.bfloat16), bp      # weights stored bf16 for the MXU

    w1, b1 = linear(ks[0], ks[1], INPUT_LAYER, HIDDEN1, INPUT_LAYER, H1P)
    w2, b2 = linear(ks[2], ks[3], HIDDEN1, HIDDEN2, H1P, H2P)
    w3, b3 = linear(ks[4], ks[5], HIDDEN2, OUTPUT_LAYER, H2P, OUTP)

    def bn(real, padded):
        gamma = jnp.zeros((1, padded), jnp.float32).at[:, :real].set(1.0)
        beta = jnp.zeros((1, padded), jnp.float32)
        return gamma, beta

    g1, beta1 = bn(HIDDEN1, H1P)
    g2, beta2 = bn(HIDDEN2, H2P)

    return dict(w1=w1, b1=b1, g1=g1, beta1=beta1,
                w2=w2, b2=b2, g2=g2, beta2=beta2,
                w3=w3, b3=b3)


if __name__ == "__main__":
    key = jax.random.PRNGKey(0)
    k_params, k_x = jax.random.split(key)

    B = 8
    x = jax.random.normal(k_x, (B, INPUT_LAYER), dtype=jnp.float32)
    params = init_params(k_params)

    out = jax.jit(my_model_forward)(x, params)
    out = jax.block_until_ready(out)
    assert out.shape == (B, OUTPUT_LAYER), out.shape
    assert bool(jnp.all(jnp.isfinite(out)))
    print("KERNEL_OK")
</pallas_src>

<mosaic_0001>
module attributes {stable_mosaic.version = 11 : i64} {
  func.func @_stats1_kernel(%arg0: i32, %arg1: memref<8x26xf32, #tpu.memory_space<vmem>>, %arg2: memref<26x256xbf16, #tpu.memory_space<vmem>>, %arg3: memref<1x256xf32, #tpu.memory_space<vmem>>, %arg4: memref<8x256xf32, #tpu.memory_space<vmem>>, %arg5: memref<8x256xf32, #tpu.memory_space<vmem>>) attributes {dimension_semantics = [#tpu.dimension_semantics<arbitrary>], iteration_bounds = array<i64: 1>, scalar_prefetch = 0 : i64, scratch_operands = 0 : i64, tpu.core_type = #tpu.core_type<tc>, window_params = [{transform_indices = @transform_0, window_bounds = array<i64: 8, 26>}, {pipeline_mode = #tpu.pipeline_mode<synchronous>, transform_indices = @transform_1, window_bounds = array<i64: 26, 256>}, {pipeline_mode = #tpu.pipeline_mode<synchronous>, transform_indices = @transform_2, window_bounds = array<i64: 1, 256>}, {pipeline_mode = #tpu.pipeline_mode<synchronous>, transform_indices = @transform_3, window_bounds = array<i64: 8, 256>}, {pipeline_mode = #tpu.pipeline_mode<synchronous>, transform_indices = @transform_4, window_bounds = array<i64: 8, 256>}]} {
    %c0_i32 = arith.constant 0 : i32
    %0 = arith.cmpi eq, %arg0, %c0_i32 : i32
    %1 = arith.extui %0 : i1 to i32
    %c0_i32_0 = arith.constant 0 : i32
    %2 = arith.cmpi ne, %1, %c0_i32_0 : i32
    scf.if %2 {
      %cst_17 = arith.constant 0.000000e+00 : f32
      %20 = vector.broadcast %cst_17 : f32 to vector<8x256xf32>
      %c0_18 = arith.constant 0 : index
      %c0_19 = arith.constant 0 : index
      %21 = vector.load %arg4[%c0_18, %c0_19] : memref<8x256xf32, #tpu.memory_space<vmem>>, vector<8x256xf32>
      tpu.vector_store %arg4[%c0_18, %c0_19], %20 {strides = array<i32>} : memref<8x256xf32, #tpu.memory_space<vmem>>, vector<8x256xf32>,
      %cst_20 = arith.constant 0.000000e+00 : f32
      %22 = vector.broadcast %cst_20 : f32 to vector<8x256xf32>
      %c0_21 = arith.constant 0 : index
      %c0_22 = arith.constant 0 : index
      %23 = vector.load %arg5[%c0_21, %c0_22] : memref<8x256xf32, #tpu.memory_space<vmem>>, vector<8x256xf32>
      tpu.vector_store %arg5[%c0_21, %c0_22], %22 {strides = array<i32>} : memref<8x256xf32, #tpu.memory_space<vmem>>, vector<8x256xf32>,
    } else {
    }
    %c0 = arith.constant 0 : index
    %c0_1 = arith.constant 0 : index
    %3 = vector.load %arg1[%c0, %c0_1] : memref<8x26xf32, #tpu.memory_space<vmem>>, vector<8x26xf32>
    %4 = arith.truncf %3 : vector<8x26xf32> to vector<8x26xbf16>
    %c0_2 = arith.constant 0 : index
    %c0_3 = arith.constant 0 : index
    %5 = vector.load %arg2[%c0_2, %c0_3] : memref<26x256xbf16, #tpu.memory_space<vmem>>, vector<26x256xbf16>
    %cst = arith.constant dense<0.000000e+00> : vector<8x256xf32>
    %6 = tpu.matmul %4, %5, %cst {dimension_numbers = #tpu.dot_dimension_numbers<[1], [0], [0], [1], [0, 0, 1, 1], [], []>} : vector<8x26xbf16>, vector<26x256xbf16>, vector<8x256xf32> -> vector<8x256xf32>
    %c0_4 = arith.constant 0 : index
    %c0_5 = arith.constant 0 : index
    %7 = vector.load %arg3[%c0_4, %c0_5] : memref<1x256xf32, #tpu.memory_space<vmem>>, vector<1x256xf32>
    %8 = vector.broadcast %7 : vector<1x256xf32> to vector<8x256xf32>
    %9 = arith.addf %6, %8 : vector<8x256xf32>
    %cst_6 = arith.constant 1.000000e+00 : f32
    %10 = vector.broadcast %cst_6 : f32 to vector<8x8xf32>
    %cst_7 = arith.constant dense<0.000000e+00> : vector<8x256xf32>
    %11 = tpu.matmul %10, %9, %cst_7 {dimension_numbers = #tpu.dot_dimension_numbers<[1], [0], [0], [1], [0, 0, 1, 1], [], []>} : vector<8x8xf32>, vector<8x256xf32>, vector<8x256xf32> -> vector<8x256xf32>
    %12 = arith.mulf %9, %9 : vector<8x256xf32>
    %cst_8 = arith.constant dense<0.000000e+00> : vector<8x256xf32>
    %13 = tpu.matmul %10, %12, %cst_8 {dimension_numbers = #tpu.dot_dimension_numbers<[1], [0], [0], [1], [0, 0, 1, 1], [], []>} : vector<8x8xf32>, vector<8x256xf32>, vector<8x256xf32> -> vector<8x256xf32>
    %c0_9 = arith.constant 0 : index
    %c0_10 = arith.constant 0 : index
    %14 = vector.load %arg4[%c0_9, %c0_10] : memref<8x256xf32, #tpu.memory_space<vmem>>, vector<8x256xf32>
    %15 = arith.addf %14, %11 : vector<8x256xf32>
    %c0_11 = arith.constant 0 : index
    %c0_12 = arith.constant 0 : index
    %16 = vector.load %arg4[%c0_11, %c0_12] : memref<8x256xf32, #tpu.memory_space<vmem>>, vector<8x256xf32>
    tpu.vector_store %arg4[%c0_11, %c0_12], %15 {strides = array<i32>} : memref<8x256xf32, #tpu.memory_space<vmem>>, vector<8x256xf32>,
    %c0_13 = arith.constant 0 : index
    %c0_14 = arith.constant 0 : index
    %17 = vector.load %arg5[%c0_13, %c0_14] : memref<8x256xf32, #tpu.memory_space<vmem>>, vector<8x256xf32>
    %18 = arith.addf %17, %13 : vector<8x256xf32>
    %c0_15 = arith.constant 0 : index
    %c0_16 = arith.constant 0 : index
    %19 = vector.load %arg5[%c0_15, %c0_16] : memref<8x256xf32, #tpu.memory_space<vmem>>, vector<8x256xf32>
    tpu.vector_store %arg5[%c0_15, %c0_16], %18 {strides = array<i32>} : memref<8x256xf32, #tpu.memory_space<vmem>>, vector<8x256xf32>,
    return
  }
  func.func @transform_0(%arg0: i32) -> (i32, i32) {
    %c0_i32 = arith.constant 0 : i32
    %c0_i32_0 = arith.constant 0 : i32
    return %arg0, %c0_i32 : i32, i32
  }
  func.func @transform_1(%arg0: i32) -> (i32, i32) {
    %c0_i32 = arith.constant 0 : i32
    %c0_i32_0 = arith.constant 0 : i32
    %c0_i32_1 = arith.constant 0 : i32
    return %c0_i32, %c0_i32_0 : i32, i32
  }
  func.func @transform_2(%arg0: i32) -> (i32, i32) {
    %c0_i32 = arith.constant 0 : i32
    %c0_i32_0 = arith.constant 0 : i32
    %c0_i32_1 = arith.constant 0 : i32
    return %c0_i32, %c0_i32_0 : i32, i32
  }
  func.func @transform_3(%arg0: i32) -> (i32, i32) {
    %c0_i32 = arith.constant 0 : i32
    %c0_i32_0 = arith.constant 0 : i32
    %c0_i32_1 = arith.constant 0 : i32
    return %c0_i32, %c0_i32_0 : i32, i32
  }
  func.func @transform_4(%arg0: i32) -> (i32, i32) {
    %c0_i32 = arith.constant 0 : i32
    %c0_i32_0 = arith.constant 0 : i32
    %c0_i32_1 = arith.constant 0 : i32
    return %c0_i32, %c0_i32_0 : i32, i32
  }
}

module attributes {stable_mosaic.version = 11 : i64} {
  func.func @_stats2_kernel(%arg0: i32, %arg1: memref<8x26xf32, #tpu.memory_space<vmem>>, %arg2: memref<26x256xbf16, #tpu.memory_space<vmem>>, %arg3: memref<1x256xf32, #tpu.memory_space<vmem>>, %arg4: memref<1x256xf32, #tpu.memory_space<vmem>>, %arg5: memref<1x256xf32, #tpu.memory_space<vmem>>, %arg6: memref<256x128xbf16, #tpu.memory_space<vmem>>, %arg7: memref<1x128xf32, #tpu.memory_space<vmem>>, %arg8: memref<8x128xf32, #tpu.memory_space<vmem>>, %arg9: memref<8x128xf32, #tpu.memory_space<vmem>>) attributes {dimension_semantics = [#tpu.dimension_semantics<arbitrary>], iteration_bounds = array<i64: 1>, scalar_prefetch = 0 : i64, scratch_operands = 0 : i64, tpu.core_type = #tpu.core_type<tc>, window_params = [{transform_indices = @transform_0, window_bounds = array<i64: 8, 26>}, {pipeline_mode = #tpu.pipeline_mode<synchronous>, transform_indices = @transform_1, window_bounds = array<i64: 26, 256>}, {pipeline_mode = #tpu.pipeline_mode<synchronous>, transform_indices = @transform_2, window_bounds = array<i64: 1, 256>}, {pipeline_mode = #tpu.pipeline_mode<synchronous>, transform_indices = @transform_3, window_bounds = array<i64: 1, 256>}, {pipeline_mode = #tpu.pipeline_mode<synchronous>, transform_indices = @transform_4, window_bounds = array<i64: 1, 256>}, {pipeline_mode = #tpu.pipeline_mode<synchronous>, transform_indices = @transform_5, window_bounds = array<i64: 256, 128>}, {pipeline_mode = #tpu.pipeline_mode<synchronous>, transform_indices = @transform_6, window_bounds = array<i64: 1, 128>}, {pipeline_mode = #tpu.pipeline_mode<synchronous>, transform_indices = @transform_7, window_bounds = array<i64: 8, 128>}, {pipeline_mode = #tpu.pipeline_mode<synchronous>, transform_indices = @transform_8, window_bounds = array<i64: 8, 128>}]} {
    %c0_i32 = arith.constant 0 : i32
    %0 = arith.cmpi eq, %arg0, %c0_i32 : i32
    %1 = arith.extui %0 : i1 to i32
    %c0_i32_0 = arith.constant 0 : i32
    %2 = arith.cmpi ne, %1, %c0_i32_0 : i32
    scf.if %2 {
      %cst_27 = arith.constant 0.000000e+00 : f32
      %34 = vector.broadcast %cst_27 : f32 to vector<8x128xf32>
      %c0_28 = arith.constant 0 : index
      %c0_29 = arith.constant 0 : index
      %35 = vector.load %arg8[%c0_28, %c0_29] : memref<8x128xf32, #tpu.memory_space<vmem>>, vector<8x128xf32>
      tpu.vector_store %arg8[%c0_28, %c0_29], %34 {strides = array<i32>} : memref<8x128xf32, #tpu.memory_space<vmem>>, vector<8x128xf32>,
      %cst_30 = arith.constant 0.000000e+00 : f32
      %36 = vector.broadcast %cst_30 : f32 to vector<8x128xf32>
      %c0_31 = arith.constant 0 : index
      %c0_32 = arith.constant 0 : index
      %37 = vector.load %arg9[%c0_31, %c0_32] : memref<8x128xf32, #tpu.memory_space<vmem>>, vector<8x128xf32>
      tpu.vector_store %arg9[%c0_31, %c0_32], %36 {strides = array<i32>} : memref<8x128xf32, #tpu.memory_space<vmem>>, vector<8x128xf32>,
    } else {
    }
    %c0 = arith.constant 0 : index
    %c0_1 = arith.constant 0 : index
    %3 = vector.load %arg1[%c0, %c0_1] : memref<8x26xf32, #tpu.memory_space<vmem>>, vector<8x26xf32>
    %4 = arith.truncf %3 : vector<8x26xf32> to vector<8x26xbf16>
    %c0_2 = arith.constant 0 : index
    %c0_3 = arith.constant 0 : index
    %5 = vector.load %arg2[%c0_2, %c0_3] : memref<26x256xbf16, #tpu.memory_space<vmem>>, vector<26x256xbf16>
    %cst = arith.constant dense<0.000000e+00> : vector<8x256xf32>
    %6 = tpu.matmul %4, %5, %cst {dimension_numbers = #tpu.dot_dimension_numbers<[1], [0], [0], [1], [0, 0, 1, 1], [], []>} : vector<8x26xbf16>, vector<26x256xbf16>, vector<8x256xf32> -> vector<8x256xf32>
    %c0_4 = arith.constant 0 : index
    %c0_5 = arith.constant 0 : index
    %7 = vector.load %arg3[%c0_4, %c0_5] : memref<1x256xf32, #tpu.memory_space<vmem>>, vector<1x256xf32>
    %8 = vector.broadcast %7 : vector<1x256xf32> to vector<8x256xf32>
    %9 = arith.addf %6, %8 : vector<8x256xf32>
    %c0_6 = arith.constant 0 : index
    %c0_7 = arith.constant 0 : index
    %10 = vector.load %arg4[%c0_6, %c0_7] : memref<1x256xf32, #tpu.memory_space<vmem>>, vector<1x256xf32>
    %11 = vector.broadcast %10 : vector<1x256xf32> to vector<8x256xf32>
    %12 = arith.mulf %9, %11 : vector<8x256xf32>
    %c0_8 = arith.constant 0 : index
    %c0_9 = arith.constant 0 : index
    %13 = vector.load %arg5[%c0_8, %c0_9] : memref<1x256xf32, #tpu.memory_space<vmem>>, vector<1x256xf32>
    %14 = vector.broadcast %13 : vector<1x256xf32> to vector<8x256xf32>
    %15 = arith.addf %12, %14 : vector<8x256xf32>
    %cst_10 = arith.constant 0.000000e+00 : f32
    %16 = vector.broadcast %cst_10 : f32 to vector<8x256xf32>
    %17 = arith.maximumf %15, %16 : vector<8x256xf32>
    %18 = arith.truncf %17 : vector<8x256xf32> to vector<8x256xbf16>
    %c0_11 = arith.constant 0 : index
    %c0_12 = arith.constant 0 : index
    %19 = vector.load %arg6[%c0_11, %c0_12] : memref<256x128xbf16, #tpu.memory_space<vmem>>, vector<256x128xbf16>
    %cst_13 = arith.constant dense<0.000000e+00> : vector<8x128xf32>
    %20 = tpu.matmul %18, %19, %cst_13 {dimension_numbers = #tpu.dot_dimension_numbers<[1], [0], [0], [1], [0, 0, 1, 1], [], []>} : vector<8x256xbf16>, vector<256x128xbf16>, vector<8x128xf32> -> vector<8x128xf32>
    %c0_14 = arith.constant 0 : index
    %c0_15 = arith.constant 0 : index
    %21 = vector.load %arg7[%c0_14, %c0_15] : memref<1x128xf32, #tpu.memory_space<vmem>>, vector<1x128xf32>
    %22 = vector.broadcast %21 : vector<1x128xf32> to vector<8x128xf32>
    %23 = arith.addf %20, %22 : vector<8x128xf32>
    %cst_16 = arith.constant 1.000000e+00 : f32
    %24 = vector.broadcast %cst_16 : f32 to vector<8x8xf32>
    %cst_17 = arith.constant dense<0.000000e+00> : vector<8x128xf32>
    %25 = tpu.matmul %24, %23, %cst_17 {dimension_numbers = #tpu.dot_dimension_numbers<[1], [0], [0], [1], [0, 0, 1, 1], [], []>} : vector<8x8xf32>, vector<8x128xf32>, vector<8x128xf32> -> vector<8x128xf32>
    %26 = arith.mulf %23, %23 : vector<8x128xf32>
    %cst_18 = arith.constant dense<0.000000e+00> : vector<8x128xf32>
    %27 = tpu.matmul %24, %26, %cst_18 {dimension_numbers = #tpu.dot_dimension_numbers<[1], [0], [0], [1], [0, 0, 1, 1], [], []>} : vector<8x8xf32>, vector<8x128xf32>, vector<8x128xf32> -> vector<8x128xf32>
    %c0_19 = arith.constant 0 : index
    %c0_20 = arith.constant 0 : index
    %28 = vector.load %arg8[%c0_19, %c0_20] : memref<8x128xf32, #tpu.memory_space<vmem>>, vector<8x128xf32>
    %29 = arith.addf %28, %25 : vector<8x128xf32>
    %c0_21 = arith.constant 0 : index
    %c0_22 = arith.constant 0 : index
    %30 = vector.load %arg8[%c0_21, %c0_22] : memref<8x128xf32, #tpu.memory_space<vmem>>, vector<8x128xf32>
    tpu.vector_store %arg8[%c0_21, %c0_22], %29 {strides = array<i32>} : memref<8x128xf32, #tpu.memory_space<vmem>>, vector<8x128xf32>,
    %c0_23 = arith.constant 0 : index
    %c0_24 = arith.constant 0 : index
    %31 = vector.load %arg9[%c0_23, %c0_24] : memref<8x128xf32, #tpu.memory_space<vmem>>, vector<8x128xf32>
    %32 = arith.addf %31, %27 : vector<8x128xf32>
    %c0_25 = arith.constant 0 : index
    %c0_26 = arith.constant 0 : index
    %33 = vector.load %arg9[%c0_25, %c0_26] : memref<8x128xf32, #tpu.memory_space<vmem>>, vector<8x128xf32>
    tpu.vector_store %arg9[%c0_25, %c0_26], %32 {strides = array<i32>} : memref<8x128xf32, #tpu.memory_space<vmem>>, vector<8x128xf32>,
    return
  }
  func.func @transform_0(%arg0: i32) -> (i32, i32) {
    %c0_i32 = arith.constant 0 : i32
    %c0_i32_0 = arith.constant 0 : i32
    return %arg0, %c0_i32 : i32, i32
  }
  func.func @transform_1(%arg0: i32) -> (i32, i32) {
    %c0_i32 = arith.constant 0 : i32
    %c0_i32_0 = arith.constant 0 : i32
    %c0_i32_1 = arith.constant 0 : i32
    return %c0_i32, %c0_i32_0 : i32, i32
  }
  func.func @transform_2(%arg0: i32) -> (i32, i32) {
    %c0_i32 = arith.constant 0 : i32
    %c0_i32_0 = arith.constant 0 : i32
    %c0_i32_1 = arith.constant 0 : i32
    return %c0_i32, %c0_i32_0 : i32, i32
  }
  func.func @transform_3(%arg0: i32) -> (i32, i32) {
    %c0_i32 = arith.constant 0 : i32
    %c0_i32_0 = arith.constant 0 : i32
    %c0_i32_1 = arith.constant 0 : i32
    return %c0_i32, %c0_i32_0 : i32, i32
  }
  func.func @transform_4(%arg0: i32) -> (i32, i32) {
    %c0_i32 = arith.constant 0 : i32
    %c0_i32_0 = arith.constant 0 : i32
    %c0_i32_1 = arith.constant 0 : i32
    return %c0_i32, %c0_i32_0 : i32, i32
  }
  func.func @transform_5(%arg0: i32) -> (i32, i32) {
    %c0_i32 = arith.constant 0 : i32
    %c0_i32_0 = arith.constant 0 : i32
    %c0_i32_1 = arith.constant 0 : i32
    return %c0_i32, %c0_i32_0 : i32, i32
  }
  func.func @transform_6(%arg0: i32) -> (i32, i32) {
    %c0_i32 = arith.constant 0 : i32
    %c0_i32_0 = arith.constant 0 : i32
    %c0_i32_1 = arith.constant 0 : i32
    return %c0_i32, %c0_i32_0 : i32, i32
  }
  func.func @transform_7(%arg0: i32) -> (i32, i32) {
    %c0_i32 = arith.constant 0 : i32
    %c0_i32_0 = arith.constant 0 : i32
    %c0_i32_1 = arith.constant 0 : i32
    return %c0_i32, %c0_i32_0 : i32, i32
  }
  func.func @transform_8(%arg0: i32) -> (i32, i32) {
    %c0_i32 = arith.constant 0 : i32
    %c0_i32_0 = arith.constant 0 : i32
    %c0_i32_1 = arith.constant 0 : i32
    return %c0_i32, %c0_i32_0 : i32, i32
  }
}

module attributes {stable_mosaic.version = 11 : i64} {
  func.func @_fwd_kernel(%arg0: i32, %arg1: memref<8x26xf32, #tpu.memory_space<vmem>>, %arg2: memref<26x256xbf16, #tpu.memory_space<vmem>>, %arg3: memref<1x256xf32, #tpu.memory_space<vmem>>, %arg4: memref<1x256xf32, #tpu.memory_space<vmem>>, %arg5: memref<1x256xf32, #tpu.memory_space<vmem>>, %arg6: memref<256x128xbf16, #tpu.memory_space<vmem>>, %arg7: memref<1x128xf32, #tpu.memory_space<vmem>>, %arg8: memref<1x128xf32, #tpu.memory_space<vmem>>, %arg9: memref<1x128xf32, #tpu.memory_space<vmem>>, %arg10: memref<128x128xbf16, #tpu.memory_space<vmem>>, %arg11: memref<1x128xf32, #tpu.memory_space<vmem>>, %arg12: memref<8x128xf32, #tpu.memory_space<vmem>>) attributes {dimension_semantics = [#tpu.dimension_semantics<parallel>], iteration_bounds = array<i64: 1>, scalar_prefetch = 0 : i64, scratch_operands = 0 : i64, tpu.core_type = #tpu.core_type<tc>, window_params = [{transform_indices = @transform_0, window_bounds = array<i64: 8, 26>}, {pipeline_mode = #tpu.pipeline_mode<synchronous>, transform_indices = @transform_1, window_bounds = array<i64: 26, 256>}, {pipeline_mode = #tpu.pipeline_mode<synchronous>, transform_indices = @transform_2, window_bounds = array<i64: 1, 256>}, {pipeline_mode = #tpu.pipeline_mode<synchronous>, transform_indices = @transform_3, window_bounds = array<i64: 1, 256>}, {pipeline_mode = #tpu.pipeline_mode<synchronous>, transform_indices = @transform_4, window_bounds = array<i64: 1, 256>}, {pipeline_mode = #tpu.pipeline_mode<synchronous>, transform_indices = @transform_5, window_bounds = array<i64: 256, 128>}, {pipeline_mode = #tpu.pipeline_mode<synchronous>, transform_indices = @transform_6, window_bounds = array<i64: 1, 128>}, {pipeline_mode = #tpu.pipeline_mode<synchronous>, transform_indices = @transform_7, window_bounds = array<i64: 1, 128>}, {pipeline_mode = #tpu.pipeline_mode<synchronous>, transform_indices = @transform_8, window_bounds = array<i64: 1, 128>}, {pipeline_mode = #tpu.pipeline_mode<synchronous>, transform_indices = @transform_9, window_bounds = array<i64: 128, 128>}, {pipeline_mode = #tpu.pipeline_mode<synchronous>, transform_indices = @transform_10, window_bounds = array<i64: 1, 128>}, {transform_indices = @transform_11, window_bounds = array<i64: 8, 128>}]} {
    %c0 = arith.constant 0 : index
    %c0_0 = arith.constant 0 : index
    %0 = vector.load %arg1[%c0, %c0_0] : memref<8x26xf32, #tpu.memory_space<vmem>>, vector<8x26xf32>
    %1 = arith.truncf %0 : vector<8x26xf32> to vector<8x26xbf16>
    %c0_1 = arith.constant 0 : index
    %c0_2 = arith.constant 0 : index
    %2 = vector.load %arg2[%c0_1, %c0_2] : memref<26x256xbf16, #tpu.memory_space<vmem>>, vector<26x256xbf16>
    %cst = arith.constant dense<0.000000e+00> : vector<8x256xf32>
    %3 = tpu.matmul %1, %2, %cst {dimension_numbers = #tpu.dot_dimension_numbers<[1], [0], [0], [1], [0, 0, 1, 1], [], []>} : vector<8x26xbf16>, vector<26x256xbf16>, vector<8x256xf32> -> vector<8x256xf32>
    %c0_3 = arith.constant 0 : index
    %c0_4 = arith.constant 0 : index
    %4 = vector.load %arg3[%c0_3, %c0_4] : memref<1x256xf32, #tpu.memory_space<vmem>>, vector<1x256xf32>
    %5 = vector.broadcast %4 : vector<1x256xf32> to vector<8x256xf32>
    %6 = arith.addf %3, %5 : vector<8x256xf32>
    %c0_5 = arith.constant 0 : index
    %c0_6 = arith.constant 0 : index
    %7 = vector.load %arg4[%c0_5, %c0_6] : memref<1x256xf32, #tpu.memory_space<vmem>>, vector<1x256xf32>
    %8 = vector.broadcast %7 : vector<1x256xf32> to vector<8x256xf32>
    %9 = arith.mulf %6, %8 : vector<8x256xf32>
    %c0_7 = arith.constant 0 : index
    %c0_8 = arith.constant 0 : index
    %10 = vector.load %arg5[%c0_7, %c0_8] : memref<1x256xf32, #tpu.memory_space<vmem>>, vector<1x256xf32>
    %11 = vector.broadcast %10 : vector<1x256xf32> to vector<8x256xf32>
    %12 = arith.addf %9, %11 : vector<8x256xf32>
    %cst_9 = arith.constant 0.000000e+00 : f32
    %13 = vector.broadcast %cst_9 : f32 to vector<8x256xf32>
    %14 = arith.maximumf %12, %13 : vector<8x256xf32>
    %15 = arith.truncf %14 : vector<8x256xf32> to vector<8x256xbf16>
    %c0_10 = arith.constant 0 : index
    %c0_11 = arith.constant 0 : index
    %16 = vector.load %arg6[%c0_10, %c0_11] : memref<256x128xbf16, #tpu.memory_space<vmem>>, vector<256x128xbf16>
    %cst_12 = arith.constant dense<0.000000e+00> : vector<8x128xf32>
    %17 = tpu.matmul %15, %16, %cst_12 {dimension_numbers = #tpu.dot_dimension_numbers<[1], [0], [0], [1], [0, 0, 1, 1], [], []>} : vector<8x256xbf16>, vector<256x128xbf16>, vector<8x128xf32> -> vector<8x128xf32>
    %c0_13 = arith.constant 0 : index
    %c0_14 = arith.constant 0 : index
    %18 = vector.load %arg7[%c0_13, %c0_14] : memref<1x128xf32, #tpu.memory_space<vmem>>, vector<1x128xf32>
    %19 = vector.broadcast %18 : vector<1x128xf32> to vector<8x128xf32>
    %20 = arith.addf %17, %19 : vector<8x128xf32>
    %c0_15 = arith.constant 0 : index
    %c0_16 = arith.constant 0 : index
    %21 = vector.load %arg8[%c0_15, %c0_16] : memref<1x128xf32, #tpu.memory_space<vmem>>, vector<1x128xf32>
    %22 = vector.broadcast %21 : vector<1x128xf32> to vector<8x128xf32>
    %23 = arith.mulf %20, %22 : vector<8x128xf32>
    %c0_17 = arith.constant 0 : index
    %c0_18 = arith.constant 0 : index
    %24 = vector.load %arg9[%c0_17, %c0_18] : memref<1x128xf32, #tpu.memory_space<vmem>>, vector<1x128xf32>
    %25 = vector.broadcast %24 : vector<1x128xf32> to vector<8x128xf32>
    %26 = arith.addf %23, %25 : vector<8x128xf32>
    %cst_19 = arith.constant 0.000000e+00 : f32
    %27 = vector.broadcast %cst_19 : f32 to vector<8x128xf32>
    %28 = arith.maximumf %26, %27 : vector<8x128xf32>
    %29 = arith.truncf %28 : vector<8x128xf32> to vector<8x128xbf16>
    %c0_20 = arith.constant 0 : index
    %c0_21 = arith.constant 0 : index
    %30 = vector.load %arg10[%c0_20, %c0_21] : memref<128x128xbf16, #tpu.memory_space<vmem>>, vector<128x128xbf16>
    %cst_22 = arith.constant dense<0.000000e+00> : vector<8x128xf32>
    %31 = tpu.matmul %29, %30, %cst_22 {dimension_numbers = #tpu.dot_dimension_numbers<[1], [0], [0], [1], [0, 0, 1, 1], [], []>} : vector<8x128xbf16>, vector<128x128xbf16>, vector<8x128xf32> -> vector<8x128xf32>
    %c0_23 = arith.constant 0 : index
    %c0_24 = arith.constant 0 : index
    %32 = vector.load %arg11[%c0_23, %c0_24] : memref<1x128xf32, #tpu.memory_space<vmem>>, vector<1x128xf32>
    %33 = vector.broadcast %32 : vector<1x128xf32> to vector<8x128xf32>
    %34 = arith.addf %31, %33 : vector<8x128xf32>
    %c0_25 = arith.constant 0 : index
    %c0_26 = arith.constant 0 : index
    %35 = vector.load %arg12[%c0_25, %c0_26] : memref<8x128xf32, #tpu.memory_space<vmem>>, vector<8x128xf32>
    tpu.vector_store %arg12[%c0_25, %c0_26], %34 {strides = array<i32>} : memref<8x128xf32, #tpu.memory_space<vmem>>, vector<8x128xf32>,
    return
  }
  func.func @transform_0(%arg0: i32) -> (i32, i32) {
    %c0_i32 = arith.constant 0 : i32
    %c0_i32_0 = arith.constant 0 : i32
    return %arg0, %c0_i32 : i32, i32
  }
  func.func @transform_1(%arg0: i32) -> (i32, i32) {
    %c0_i32 = arith.constant 0 : i32
    %c0_i32_0 = arith.constant 0 : i32
    %c0_i32_1 = arith.constant 0 : i32
    return %c0_i32, %c0_i32_0 : i32, i32
  }
  func.func @transform_2(%arg0: i32) -> (i32, i32) {
    %c0_i32 = arith.constant 0 : i32
    %c0_i32_0 = arith.constant 0 : i32
    %c0_i32_1 = arith.constant 0 : i32
    return %c0_i32, %c0_i32_0 : i32, i32
  }
  func.func @transform_3(%arg0: i32) -> (i32, i32) {
    %c0_i32 = arith.constant 0 : i32
    %c0_i32_0 = arith.constant 0 : i32
    %c0_i32_1 = arith.constant 0 : i32
    return %c0_i32, %c0_i32_0 : i32, i32
  }
  func.func @transform_4(%arg0: i32) -> (i32, i32) {
    %c0_i32 = arith.constant 0 : i32
    %c0_i32_0 = arith.constant 0 : i32
    %c0_i32_1 = arith.constant 0 : i32
    return %c0_i32, %c0_i32_0 : i32, i32
  }
  func.func @transform_5(%arg0: i32) -> (i32, i32) {
    %c0_i32 = arith.constant 0 : i32
    %c0_i32_0 = arith.constant 0 : i32
    %c0_i32_1 = arith.constant 0 : i32
    return %c0_i32, %c0_i32_0 : i32, i32
  }
  func.func @transform_6(%arg0: i32) -> (i32, i32) {
    %c0_i32 = arith.constant 0 : i32
    %c0_i32_0 = arith.constant 0 : i32
    %c0_i32_1 = arith.constant 0 : i32
    return %c0_i32, %c0_i32_0 : i32, i32
  }
  func.func @transform_7(%arg0: i32) -> (i32, i32) {
    %c0_i32 = arith.constant 0 : i32
    %c0_i32_0 = arith.constant 0 : i32
    %c0_i32_1 = arith.constant 0 : i32
    return %c0_i32, %c0_i32_0 : i32, i32
  }
  func.func @transform_8(%arg0: i32) -> (i32, i32) {
    %c0_i32 = arith.constant 0 : i32
    %c0_i32_0 = arith.constant 0 : i32
    %c0_i32_1 = arith.constant 0 : i32
    return %c0_i32, %c0_i32_0 : i32, i32
  }
  func.func @transform_9(%arg0: i32) -> (i32, i32) {
    %c0_i32 = arith.constant 0 : i32
    %c0_i32_0 = arith.constant 0 : i32
    %c0_i32_1 = arith.constant 0 : i32
    return %c0_i32, %c0_i32_0 : i32, i32
  }
  func.func @transform_10(%arg0: i32) -> (i32, i32) {
    %c0_i32 = arith.constant 0 : i32
    %c0_i32_0 = arith.constant 0 : i32
    %c0_i32_1 = arith.constant 0 : i32
    return %c0_i32, %c0_i32_0 : i32, i32
  }
  func.func @transform_11(%arg0: i32) -> (i32, i32) {
    %c0_i32 = arith.constant 0 : i32
    %c0_i32_0 = arith.constant 0 : i32
    return %arg0, %c0_i32 : i32, i32
  }
}

</mosaic_0001>

<bundles_post_ra>
// kernel: my_model_forward.3
= control target key start
LH: loop header
LB: loop body
LE: loop exit
PB: predicated region body
PF: predicated region fallthrough
CT: control target
= control target key end

     0   :  { %10 = vsyncpa [#allocation3], 0  ;;  %s338_s15 = smov [#allocation2]   ;;  %s390_s0 = inlined_call_operand.vmem [shape: f32[8,26], index: 0, kind: input, shape index: {}]   ;;  %s391_s1 = inlined_call_operand.hbm [shape: bf16[26,256], index: 1, kind: input, shape index: {}]   ;;  %s392_s2 = inlined_call_operand.vmem [shape: f32[1,256], index: 2, kind: input, shape index: {}]   ;;  %s393_s3 = inlined_call_operand.vmem [shape: f32[8,256], index: 3, kind: output, shape index: {0}]   ;;  %s394_s4 = inlined_call_operand.vmem [shape: f32[8,256], index: 4, kind: output, shape index: {1}]  }
   0x1   :  { %s18_s16 = sshll.u32 %s338_s15, 4  ;;  %s19_s16 = int_to_ptr.vmem [resolvable:$true] %s18_s16 }
   0x2   :  { %s324_s17 = scalar_lea.vmem %s19_s16, 512  ;;  %p329_p1 = scmp.lt.s32.totalorder %s19_s16, %s19_s16 }
   0x3   :  { %p325_p0 = scmp.ne.s32.totalorder %s19_s16, %s324_s17  ;;  %p330_p2 = scmp.lt.s32.totalorder %s324_s17, %s324_s17 }
   0x5   :  { %p331_p3 = por %p330_p2, %p329_p1 }
   0x7   :  { %p332_p4 = pnand %p331_p3, %p325_p0 }
   0x9   :  { %335 = shalt.err (!%p332_p4)
}
   0xa   :  { %s339_s18 = smov 128   ;;  %s340_s19 = smov 8  }
   0xb   :  { %24 = dma.hbm_to_vmem [thread:$0]  %s391_s1, 512, %s19_s16, [#allocation3], %s339_s18, %s339_s18, %s340_s19  }
   0xc   :  { %336 = dma.done.wait [#allocation3], 512  }
   0xd   :  { %337 = vsyncadd [#allocation3], 4294966784  ;;  %v341_v0 = vmov 0   ;;  %vm79_vm0 = vcmask 1044480   ;;  %v313_v3 = vld [vmem:[#allocation2 + $0x4] ss:$8 sps:$4 sm:$0xff]   ;;  %v47_v9 = vlaneseq }
   0xe   :  { %118 = vmatprep.mubr.bf16.mxu0 %v341_v0  ;;  %v310_v1 = vld [vmem:[#allocation2 + $0x14] ss:$8 sps:$4 sm:$0x1f]   ;;  %v312_v2 = vld [vmem:[#allocation2 + $0x10] ss:$8 sps:$4 sm:$0x1f]  }
   0xf   :  { %300 = vmatprep.subr.msk.bf16.mxu0 %vm79_vm0, %v310_v1  ;;  %v81_v4 = vsel %vm79_vm0, %v312_v2, 0  ;;  %v315_v5 = vld [vmem:[#allocation2] ss:$8 sps:$4 sm:$0xff]   ;;  %vm75_vm1 = vcmask 211968   ;;  %v342_v8 = vmov 0.0   ;;  %v48_v10 = vshrl.u32 %v47_v9, 7 }
  0x10   :  { %99 = vmatpush1.bf16.msra.mxu0 %v81_v4  ;;  %v39_v6 = vld [vmem:[%s390_s0] sm:$0xff]  ;;  %195 = vmatprep.mubr.f32.mxu1 %v342_v8  ;;  %vm127_vm2 = vcmask 64512   ;;  %v343_v24 = vmov 1.0  }
  0x11   :  { %100 = vmatprep.subr.bf16.mxu0 %v313_v3  ;;  %v40_v7 = vpack.c.bf16 %v39_v6, %v39_v6  ;;  %v49_v11 = vsub.s32 0, %v48_v10  ;;  %v45_v12 = vld [vmem:[%s392_s2] sm:$0x3]  ;;  %v53_v13 = vsub.s32 1, %v48_v10 }
  0x13   :  { %v50_v14 = vrot.slane %v45_v12, %v49_v11  ;;  %v54_v15 = vrot.slane %v45_v12, %v53_v13 }
  0x14   :  { %101 = vmatpush1.bf16.msra.mxu0 %v315_v5 }
  0x17   :  { %301 = vmatmul.mubr.msk.bf16.vlgmr.msra.gmra.mxu0 %vm75_vm1, %v40_v7 }
  0xd7   :  { %v120_v16 = vpop.f32.mrf.mxu0 }
  0xd8   :  { %v121_v17 = vadd.f32 %v120_v16, %v50_v14 }
  0xd9   :  { %v122_v18 = vpop.f32.mrf.mxu0 }
  0xda   :  { %v123_v19 = vadd.f32 %v122_v18, %v54_v15  ;;  %v202_v22 = vmul.f32 %v121_v17, %v121_v17 }
  0xdb   :  { %v124_v20 = vpop.f32.mrf.mxu0 }
  0xdc   :  { %v203_v21 = vmul.f32 %v123_v19, %v123_v19  ;;  %161 = vmatprep.subr.mxu1 %v123_v19 }
  0xdd   :  { %v125_v23 = vpop.f32.mrf.mxu0  ;;  %162 = vmatpush1.msra.mxu1 %v121_v17 }
  0xde   :  { %302 = vmatmul.mubr.msk.f32.vlgmr.msra.gmra.mxu1 %vm127_vm2, %v343_v24  ;;  %234 = vmatprep.subr.mxu1 %v203_v21 }
  0xdf   :  { %235 = vmatpush1.msra.mxu1 %v202_v22  ;;  %268 = vmatprep.mubr.f32.mxu1 %v342_v8 }
  0xe2   :  { %303 = vmatmul.mubr.msk.f32.vlgmr.msra.gmra.mxu1 %vm127_vm2, %v343_v24 }
 0x19e   :  { %v197_v25 = vpop.f32.mrf.mxu1 }
 0x19f   :  { %279 = vst [vmem:[%s393_s3] sm:$0xff] %v197_v25 }
 0x1a0   :  { %v199_v26 = vpop.f32.mrf.mxu1 }
 0x1a1   :  { %280 = vst [vmem:[%s393_s3 + $0x8] sm:$0xff] %v199_v26 }
 0x1a2   :  { %v270_v27 = vpop.f32.mrf.mxu1 }
 0x1a3   :  { %285 = vst [vmem:[%s394_s4] sm:$0xff] %v270_v27 }
 0x1a4   :  { %v272_v28 = vpop.f32.mrf.mxu1 }
 0x1a5   :  { %286 = vst [vmem:[%s394_s4 + $0x8] sm:$0xff] %v272_v28 }
 0x1a6   :  { %295 = vsyncpa [#allocation3], 1 }

// kernel: my_model_forward.4
= control target key start
LH: loop header
LB: loop body
LE: loop exit
PB: predicated region body
PF: predicated region fallthrough
CT: control target
= control target key end

     0   :  { %14 = vsyncpa [#allocation3], 0  ;;  %s616_s27 = smov [#allocation2]   ;;  %s706_s0 = inlined_call_operand.vmem [shape: f32[8,26], index: 0, kind: input, shape index: {}]   ;;  %s707_s1 = inlined_call_operand.vmem [shape: bf16[26,256], index: 1, kind: input, shape index: {}]   ;;  %s708_s2 = inlined_call_operand.vmem [shape: f32[1,256], index: 2, kind: input, shape index: {}]   ;;  %s709_s3 = inlined_call_operand.vmem [shape: f32[1,256], index: 3, kind: input, shape index: {}]   ;;  %s710_s4 = inlined_call_operand.vmem [shape: f32[1,256], index: 4, kind: input, shape index: {}]   ;;  %s711_s5 = inlined_call_operand.hbm [shape: bf16[256,128], index: 5, kind: input, shape index: {}]   ;;  %s712_s6 = inlined_call_operand.vmem [shape: f32[1,128], index: 6, kind: input, shape index: {}]   ;;  %s713_s7 = inlined_call_operand.vmem [shape: f32[8,128], index: 7, kind: output, shape index: {0}]   ;;  %s714_s8 = inlined_call_operand.vmem [shape: f32[8,128], index: 8, kind: output, shape index: {1}]  }
   0x1   :  { %s30_s28 = sshll.u32 %s616_s27, 4  ;;  %s31_s28 = int_to_ptr.vmem [resolvable:$true] %s30_s28 }
   0x2   :  { %s602_s29 = scalar_lea.vmem %s31_s28, 2048  ;;  %p607_p1 = scmp.lt.s32.totalorder %s31_s28, %s31_s28 }
   0x3   :  { %p603_p0 = scmp.ne.s32.totalorder %s31_s28, %s602_s29  ;;  %p608_p2 = scmp.lt.s32.totalorder %s602_s29, %s602_s29 }
   0x5   :  { %p609_p3 = por %p608_p2, %p607_p1 }
   0x7   :  { %p610_p4 = pnand %p609_p3, %p603_p0 }
   0x9   :  { %613 = shalt.err (!%p610_p4)
}
   0xa   :  { %s617_s30 = smov 64   ;;  %s618_s9 = smov 4  }
   0xb   :  { %36 = dma.hbm_to_vmem [thread:$0]  %s711_s5, 2048, %s31_s28, [#allocation3], %s617_s30, %s617_s30, %s618_s9  }
   0xc   :  { %614 = dma.done.wait [#allocation3], 2048  }
   0xd   :  { %615 = vsyncadd [#allocation3], 4294965248  ;;  %v619_v0 = vmov 0   ;;  %vm89_vm0 = vcmask 1044480   ;;  %v575_v3 = vld [vmem:[%s707_s1 + $0x4] ss:$8 sps:$4 sm:$0xff]   ;;  %v57_v24 = vlaneseq }
   0xe   :  { %128 = vmatprep.mubr.bf16.mxu0 %v619_v0  ;;  %v572_v1 = vld [vmem:[%s707_s1 + $0x14] ss:$8 sps:$4 sm:$0x1f]   ;;  %v574_v2 = vld [vmem:[%s707_s1 + $0x10] ss:$8 sps:$4 sm:$0x1f]  }
   0xf   :  { %508 = vmatprep.subr.msk.bf16.mxu0 %vm89_vm0, %v572_v1  ;;  %v577_v4 = vld [vmem:[%s707_s1] ss:$8 sps:$4 sm:$0xff]   ;;  %v91_v6 = vsel %vm89_vm0, %v574_v2, 0  ;;  %v578_v7 = vld [vmem:[#allocation2 + $0x78] sm:$0xff]   ;;  %v580_v9 = vld [vmem:[#allocation2 + $0x70] sm:$0xff]   ;;  %vm85_vm1 = vcmask 211968  }
  0x10   :  { %v49_v5 = vld [vmem:[%s706_s0] sm:$0xff]  ;;  %109 = vmatpush1.bf16.msra.mxu0 %v91_v6  ;;  %v579_v8 = vld [vmem:[#allocation2 + $0x38] sm:$0xff]   ;;  %529 = vmatprep.subr.bf16.mxu1 %v578_v7  ;;  %v581_v10 = vld [vmem:[#allocation2 + $0x30] sm:$0xff]   ;;  %v58_v25 = vshrl.u32 %v57_v24, 7  ;;  %v620_v51 = vmov 0.0   ;;  %vm621_vm2 = vmmov 0  }
  0x11   :  { %110 = vmatprep.subr.bf16.mxu0 %v575_v3  ;;  %530 = vmatpush3.bf16.msra.mxu1 %v579_v8  ;;  %v50_v11 = vpack.c.bf16 %v49_v5, %v49_v5  ;;  %v582_v12 = vld [vmem:[#allocation2 + $0x68] sm:$0xff]   ;;  %v584_v14 = vld [vmem:[#allocation2 + $0x60] sm:$0xff]   ;;  %v586_v16 = vld [vmem:[#allocation2 + $0x58] sm:$0xff]   ;;  %vm344_vm3 = vcmask 64512   ;;  %v622_v60 = vmov 1.0  }
  0x12   :  { %531 = vmatprep.subr.bf16.mxu1 %v580_v9  ;;  %v583_v13 = vld [vmem:[#allocation2 + $0x28] sm:$0xff]   ;;  %v585_v15 = vld [vmem:[#allocation2 + $0x20] sm:$0xff]   ;;  %v587_v17 = vld [vmem:[#allocation2 + $0x18] sm:$0xff]   ;;  %v59_v26 = vsub.s32 0, %v58_v25  ;;  %v63_v28 = vsub.s32 1, %v58_v25 }
  0x13   :  { %v588_v18 = vld [vmem:[#allocation2 + $0x50] sm:$0xff]   ;;  %v590_v20 = vld [vmem:[#allocation2 + $0x48] sm:$0xff]   ;;  %v592_v22 = vld [vmem:[#allocation2 + $0x40] sm:$0xff]  }
  0x14   :  { %111 = vmatpush1.bf16.msra.mxu0 %v577_v4  ;;  %v589_v19 = vld [vmem:[#allocation2 + $0x10] sm:$0xff]   ;;  %v591_v21 = vld [vmem:[#allocation2 + $0x8] sm:$0xff]   ;;  %v593_v23 = vld [vmem:[#allocation2] sm:$0xff]  }
  0x15   :  { %532 = vmatpush3.bf16.msra.mxu1 %v581_v10  ;;  %v55_v27 = vld [vmem:[%s708_s2] sm:$0x3]  ;;  %555 = vmatprep.subr.mxu0 %v620_v51 }
  0x16   :  { %533 = vmatprep.subr.bf16.mxu1 %v582_v12  ;;  %v137_v29 = vld [vmem:[%s709_s3] sm:$0x3]  ;;  %v60_v30 = vrot.slane %v55_v27, %v59_v26  ;;  %v64_v33 = vrot.slane %v55_v27, %v63_v28 }
  0x17   :  { %509 = vmatmul.mubr.msk.bf16.vlgmr.msra.gmra.mxu0 %vm85_vm1, %v50_v11  ;;  %v151_v31 = vld [vmem:[%s710_s4] sm:$0x3]  ;;  %v142_v32 = vrot.slane %v137_v29, %v59_v26  ;;  %v146_v36 = vrot.slane %v137_v29, %v63_v28 }
  0x18   :  { %v156_v37 = vrot.slane %v151_v31, %v59_v26  ;;  %v160_v41 = vrot.slane %v151_v31, %v63_v28  ;;  %557 = vmatprep.mubr.msk.f32.mxu0 %vm621_vm2, %v620_v51  ;;  %v510_v53 = vld [vmem:[%s712_s6] ss:$0 sm:$0xff] }
  0x19   :  { %534 = vmatpush3.bf16.msra.mxu1 %v583_v13 }
  0x1a   :  { %535 = vmatprep.subr.bf16.mxu1 %v584_v14 }
  0x1d   :  { %536 = vmatpush3.bf16.msra.mxu1 %v585_v15 }
  0x1e   :  { %537 = vmatprep.subr.bf16.mxu1 %v586_v16 }
  0x21   :  { %538 = vmatpush3.bf16.msra.mxu1 %v587_v17 }
  0x22   :  { %539 = vmatprep.subr.bf16.mxu1 %v588_v18 }
  0x25   :  { %540 = vmatpush3.bf16.msra.mxu1 %v589_v19 }
  0x26   :  { %541 = vmatprep.subr.bf16.mxu1 %v590_v20 }
  0x29   :  { %542 = vmatpush3.bf16.msra.mxu1 %v591_v21 }
  0x2a   :  { %543 = vmatprep.subr.bf16.mxu1 %v592_v22 }
  0x2d   :  { %544 = vmatpush3.bf16.msra.mxu1 %v593_v23 }
  0xd7   :  { %v130_v34 = vpop.f32.mrf.mxu0 }
  0xd8   :  { %v131_v35 = vadd.f32 %v130_v34, %v60_v30 }
  0xd9   :  { %v132_v38 = vpop.f32.mrf.mxu0 }
  0xda   :  { %v149_v39 = vmul.f32 %v142_v32, %v131_v35  ;;  %v133_v40 = vadd.f32 %v132_v38, %v64_v33 }
  0xdb   :  { %v134_v42 = vpop.f32.mrf.mxu0 }
  0xdc   :  { %v150_v43 = vmul.f32 %v146_v36, %v133_v40  ;;  %v163_v44 = vadd.f32 %v156_v37, %v149_v39 }
  0xdd   :  { %v135_v45 = vpop.f32.mrf.mxu0 }
  0xde   :  { %v164_v46 = vadd.f32 %v160_v41, %v150_v43  ;;  %v165_v47 = vmax.f32 %v163_v44, 0.0 }
  0xe0   :  { %v166_v48 = vmax.f32 %v164_v46, 0.0  ;;  %v167_v50 = vpack.c.bf16 %v165_v47, %v165_v47 }
  0xe2   :  { %v168_v49 = vpack.c.bf16 %v166_v48, %v166_v48 }
  0xe4   :  { %336 = vmatprep.mubr.bf16.mxu1 %v168_v49 }
  0xe5   :  { %337 = vmatmul.mubr.bf16.vlgmr.msra.gmra.mxu1 %v167_v50 }
 0x1a5   :  { %v545_v52 = vpop.f32.mrf.mxu1 }
 0x1a7   :  { %v546_v54 = vpop.f32.mrf.mxu1 }
 0x1a8   :  { %v547_v55 = vadd.f32 %v546_v54, %v545_v52 }
 0x1a9   :  { %v548_v56 = vpop.f32.mrf.mxu1 }
 0x1aa   :  { %v339_v57 = vadd.f32 %v547_v55, %v510_v53 }
 0x1ab   :  { %v549_v58 = vpop.f32.mrf.mxu1 }
 0x1ac   :  { %v418_v59 = vmul.f32 %v339_v57, %v339_v57  ;;  %556 = vmatpush3.msra.mxu0 %v339_v57 }
 0x1ad   :  { %560 = vmatprep.subr.mxu0 %v620_v51  ;;  %558 = vmatmul.mubr.msk.f32.vlgmr.msra.gmra.mxu0 %vm344_vm3, %v622_v60 }
 0x1ae   :  { %561 = vmatpush3.msra.mxu0 %v418_v59  ;;  %562 = vmatprep.mubr.msk.f32.mxu0 %vm621_vm2, %v620_v51 }
 0x1b1   :  { %563 = vmatmul.mubr.msk.f32.vlgmr.msra.gmra.mxu0 %vm344_vm3, %v622_v60 }
 0x26d   :  { %v414_v61 = vpop.f32.mrf.mxu0 }
 0x26e   :  { %491 = vst [vmem:[%s713_s7] sm:$0xff] %v414_v61 }
 0x26f   :  { %v559_v62 = vpop.f32.mrf.mxu0 }
 0x271   :  { %v485_v63 = vpop.f32.mrf.mxu0 }
 0x272   :  { %494 = vst [vmem:[%s714_s8] sm:$0xff] %v485_v63 }
 0x273   :  { %v564_v0 = vpop.f32.mrf.mxu0 }
 0x274   :  { %503 = vsyncpa [#allocation3], 1 }

// kernel: my_model_forward.5
= control target key start
LH: loop header
LB: loop body
LE: loop exit
PB: predicated region body
PF: predicated region fallthrough
CT: control target
= control target key end

     0   :  { %vm79_vm0 = vcmask 1044480   ;;  %v586_v1 = vmov 0   ;;  %vm75_vm1 = vcmask 211968   ;;  %v587_v24 = vmov 0.0   ;;  %s760_s1 = inlined_call_operand.vmem [shape: bf16[26,256], index: 1, kind: input, shape index: {}]   ;;  %s761_s0 = inlined_call_operand.vmem [shape: f32[8,26], index: 0, kind: input, shape index: {}]   ;;  %s762_s5 = inlined_call_operand.vmem [shape: bf16[256,128], index: 5, kind: input, shape index: {}]   ;;  %s763_s9 = inlined_call_operand.vmem [shape: bf16[128,128], index: 9, kind: input, shape index: {}]   ;;  %s764_s2 = inlined_call_operand.vmem [shape: f32[1,256], index: 2, kind: input, shape index: {}]   ;;  %s765_s3 = inlined_call_operand.vmem [shape: f32[1,256], index: 3, kind: input, shape index: {}]   ;;  %s766_s4 = inlined_call_operand.vmem [shape: f32[1,256], index: 4, kind: input, shape index: {}]   ;;  %s767_s6 = inlined_call_operand.vmem [shape: f32[1,128], index: 6, kind: input, shape index: {}]   ;;  %s768_s7 = inlined_call_operand.vmem [shape: f32[1,128], index: 7, kind: input, shape index: {}]   ;;  %s769_s8 = inlined_call_operand.vmem [shape: f32[1,128], index: 8, kind: input, shape index: {}]   ;;  %s770_s10 = inlined_call_operand.vmem [shape: f32[1,128], index: 10, kind: input, shape index: {}]   ;;  %s771_s11 = inlined_call_operand.vmem [shape: f32[8,128], index: 11, kind: output, shape index: {}]  }
   0x1   :  { %v556_v0 = vld [vmem:[%s760_s1 + $0x14] ss:$8 sps:$4 sm:$0x1f]   ;;  %118 = vmatprep.mubr.bf16.mxu0 %v586_v1  ;;  %v558_v2 = vld [vmem:[%s760_s1 + $0x10] ss:$8 sps:$4 sm:$0x1f]   ;;  %v47_v29 = vlaneseq }
   0x2   :  { %472 = vmatprep.subr.msk.bf16.mxu0 %vm79_vm0, %v556_v0  ;;  %v559_v3 = vld [vmem:[%s760_s1 + $0x4] ss:$8 sps:$4 sm:$0xff]   ;;  %v561_v4 = vld [vmem:[%s760_s1] ss:$8 sps:$4 sm:$0xff]   ;;  %v81_v6 = vsel %vm79_vm0, %v558_v2, 0  ;;  %v562_v7 = vld [vmem:[%s762_s5 + $0x78] sm:$0xff]  }
   0x3   :  { %v39_v5 = vld [vmem:[%s761_s0] sm:$0xff]  ;;  %99 = vmatpush1.bf16.msra.mxu0 %v81_v6  ;;  %v563_v8 = vld [vmem:[%s762_s5 + $0x38] sm:$0xff]   ;;  %502 = vmatprep.subr.bf16.mxu1 %v562_v7  ;;  %v564_v9 = vld [vmem:[%s762_s5 + $0x70] sm:$0xff]   ;;  %v48_v30 = vshrl.u32 %v47_v29, 7  ;;  %vm588_vm2 = vmmov 0  }
   0x4   :  { %100 = vmatprep.subr.bf16.mxu0 %v559_v3  ;;  %503 = vmatpush3.bf16.msra.mxu1 %v563_v8  ;;  %v565_v10 = vld [vmem:[%s762_s5 + $0x30] sm:$0xff]   ;;  %v40_v11 = vpack.c.bf16 %v39_v5, %v39_v5  ;;  %v566_v12 = vld [vmem:[%s762_s5 + $0x68] sm:$0xff]   ;;  %v568_v14 = vld [vmem:[%s762_s5 + $0x60] sm:$0xff]  }
   0x5   :  { %504 = vmatprep.subr.bf16.mxu1 %v564_v9  ;;  %v567_v13 = vld [vmem:[%s762_s5 + $0x28] sm:$0xff]   ;;  %v569_v15 = vld [vmem:[%s762_s5 + $0x20] sm:$0xff]   ;;  %v570_v16 = vld [vmem:[%s762_s5 + $0x58] sm:$0xff]   ;;  %v49_v31 = vsub.s32 0, %v48_v30  ;;  %v53_v33 = vsub.s32 1, %v48_v30 }
   0x6   :  { %v571_v17 = vld [vmem:[%s762_s5 + $0x18] sm:$0xff]   ;;  %v572_v18 = vld [vmem:[%s762_s5 + $0x50] sm:$0xff]   ;;  %v574_v20 = vld [vmem:[%s762_s5 + $0x48] sm:$0xff]  }
   0x7   :  { %101 = vmatpush1.bf16.msra.mxu0 %v561_v4  ;;  %v573_v19 = vld [vmem:[%s762_s5 + $0x10] sm:$0xff]   ;;  %v575_v21 = vld [vmem:[%s762_s5 + $0x8] sm:$0xff]   ;;  %v576_v22 = vld [vmem:[%s762_s5 + $0x40] sm:$0xff]  }
   0x8   :  { %505 = vmatpush3.bf16.msra.mxu1 %v565_v10  ;;  %v577_v23 = vld [vmem:[%s762_s5] sm:$0xff]   ;;  %533 = vmatprep.subr.bf16.mxu0 %v587_v24  ;;  %v578_v25 = vld [vmem:[%s763_s9 + $0x38] sm:$0xff]   ;;  %v579_v26 = vld [vmem:[%s763_s9 + $0x30] sm:$0xff]  }
   0x9   :  { %506 = vmatprep.subr.bf16.mxu1 %v566_v12  ;;  %v580_v27 = vld [vmem:[%s763_s9 + $0x28] sm:$0xff]   ;;  %v581_v28 = vld [vmem:[%s763_s9 + $0x20] sm:$0xff]   ;;  %v582_v56 = vld [vmem:[%s763_s9 + $0x18] sm:$0xff]  }
   0xa   :  { %473 = vmatmul.mubr.msk.bf16.vlgmr.msra.gmra.mxu0 %vm75_vm1, %v40_v11  ;;  %v45_v32 = vld [vmem:[%s764_s2] sm:$0x3]  ;;  %v583_v57 = vld [vmem:[%s763_s9 + $0x10] sm:$0xff]   ;;  %v584_v58 = vld [vmem:[%s763_s9 + $0x8] sm:$0xff]  }
   0xb   :  { %534 = vmatpush3.bf16.msra.mxu0 %v578_v25  ;;  %v127_v34 = vld [vmem:[%s765_s3] sm:$0x3]  ;;  %v50_v35 = vrot.slane %v45_v32, %v49_v31  ;;  %v54_v38 = vrot.slane %v45_v32, %v53_v33  ;;  %549 = vmatprep.mubr.msk.bf16.mxu0 %vm588_vm2, %v587_v24 }
   0xc   :  { %507 = vmatpush3.bf16.msra.mxu1 %v567_v13  ;;  %535 = vmatprep.subr.bf16.mxu0 %v587_v24  ;;  %v141_v36 = vld [vmem:[%s766_s4] sm:$0x3]  ;;  %v132_v37 = vrot.slane %v127_v34, %v49_v31  ;;  %v136_v41 = vrot.slane %v127_v34, %v53_v33 }
   0xd   :  { %508 = vmatprep.subr.bf16.mxu1 %v568_v14  ;;  %v146_v42 = vrot.slane %v141_v36, %v49_v31  ;;  %v150_v46 = vrot.slane %v141_v36, %v53_v33  ;;  %v585_v59 = vld [vmem:[%s763_s9] sm:$0xff]  }
   0xe   :  { %v474_v61 = vld [vmem:[%s767_s6] ss:$0 sm:$0xff] }
   0xf   :  { %536 = vmatpush3.bf16.msra.mxu0 %v579_v26  ;;  %v491_v0 = vld [vmem:[%s768_s7] ss:$0 sm:$0xff] }
  0x10   :  { %509 = vmatpush3.bf16.msra.mxu1 %v569_v15  ;;  %537 = vmatprep.subr.bf16.mxu0 %v587_v24  ;;  %v492_v3 = vld [vmem:[%s769_s8] ss:$0 sm:$0xff] }
  0x11   :  { %510 = vmatprep.subr.bf16.mxu1 %v570_v16  ;;  %v493_v9 = vld [vmem:[%s770_s10] ss:$0 sm:$0xff] }
  0x13   :  { %538 = vmatpush3.bf16.msra.mxu0 %v580_v27 }
  0x14   :  { %511 = vmatpush3.bf16.msra.mxu1 %v571_v17  ;;  %539 = vmatprep.subr.bf16.mxu0 %v587_v24 }
  0x15   :  { %512 = vmatprep.subr.bf16.mxu1 %v572_v18 }
  0x17   :  { %540 = vmatpush3.bf16.msra.mxu0 %v581_v28 }
  0x18   :  { %513 = vmatpush3.bf16.msra.mxu1 %v573_v19  ;;  %541 = vmatprep.subr.bf16.mxu0 %v587_v24 }
  0x19   :  { %514 = vmatprep.subr.bf16.mxu1 %v574_v20 }
  0x1b   :  { %542 = vmatpush3.bf16.msra.mxu0 %v582_v56 }
  0x1c   :  { %515 = vmatpush3.bf16.msra.mxu1 %v575_v21  ;;  %543 = vmatprep.subr.bf16.mxu0 %v587_v24 }
  0x1d   :  { %516 = vmatprep.subr.bf16.mxu1 %v576_v22 }
  0x1f   :  { %544 = vmatpush3.bf16.msra.mxu0 %v583_v57 }
  0x20   :  { %517 = vmatpush3.bf16.msra.mxu1 %v577_v23  ;;  %545 = vmatprep.subr.bf16.mxu0 %v587_v24 }
  0x23   :  { %546 = vmatpush3.bf16.msra.mxu0 %v584_v58 }
  0x24   :  { %547 = vmatprep.subr.bf16.mxu0 %v587_v24 }
  0x27   :  { %548 = vmatpush3.bf16.msra.mxu0 %v585_v59 }
  0xca   :  { %v120_v39 = vpop.f32.mrf.mxu0 }
  0xcb   :  { %v121_v40 = vadd.f32 %v120_v39, %v50_v35 }
  0xcc   :  { %v122_v43 = vpop.f32.mrf.mxu0 }
  0xcd   :  { %v139_v44 = vmul.f32 %v132_v37, %v121_v40  ;;  %v123_v45 = vadd.f32 %v122_v43, %v54_v38 }
  0xce   :  { %v124_v47 = vpop.f32.mrf.mxu0 }
  0xcf   :  { %v140_v48 = vmul.f32 %v136_v41, %v123_v45  ;;  %v153_v49 = vadd.f32 %v146_v42, %v139_v44 }
  0xd0   :  { %v125_v50 = vpop.f32.mrf.mxu0 }
  0xd1   :  { %v154_v51 = vadd.f32 %v150_v46, %v140_v48  ;;  %v155_v52 = vmax.f32 %v153_v49, 0.0 }
  0xd3   :  { %v156_v53 = vmax.f32 %v154_v51, 0.0  ;;  %v157_v55 = vpack.c.bf16 %v155_v52, %v155_v52 }
  0xd5   :  { %v158_v54 = vpack.c.bf16 %v156_v53, %v156_v53 }
  0xd7   :  { %326 = vmatprep.mubr.bf16.mxu1 %v158_v54 }
  0xd8   :  { %327 = vmatmul.mubr.bf16.vlgmr.msra.gmra.mxu1 %v157_v55 }
 0x198   :  { %v518_v60 = vpop.f32.mrf.mxu1 }
 0x19a   :  { %v519_v62 = vpop.f32.mrf.mxu1 }
 0x19b   :  { %v520_v63 = vadd.f32 %v519_v62, %v518_v60 }
 0x19c   :  { %v521_v1 = vpop.f32.mrf.mxu1 }
 0x19d   :  { %v329_v2 = vadd.f32 %v520_v63, %v474_v61 }
 0x19e   :  { %v522_v4 = vpop.f32.mrf.mxu1 }
 0x19f   :  { %v341_v5 = vmul.f32 %v491_v0, %v329_v2 }
 0x1a1   :  { %v349_v6 = vadd.f32 %v492_v3, %v341_v5 }
 0x1a3   :  { %v350_v7 = vmax.f32 %v349_v6, 0.0 }
 0x1a5   :  { %v351_v8 = vpack.c.bf16 %v350_v7, %v350_v7 }
 0x1a7   :  { %550 = vmatmul.mubr.bf16.vlgmr.msra.gmra.mxu0 %v351_v8 }
 0x267   :  { %v457_v10 = vpop.f32.mrf.mxu0 }
 0x268   :  { %v458_v11 = vadd.f32 %v493_v9, %v457_v10 }
 0x269   :  { %v551_v12 = vpop.f32.mrf.mxu0 }
 0x26a   :  { %463 = vst [vmem:[%s771_s11] sm:$0xff] %v458_v11 }
 0x26b   :  { %v460_v13 = vpop.f32.mrf.mxu0 }
 0x26d   :  { %v552_v14 = vpop.f32.mrf.mxu0 }

</bundles_post_ra>
